<compile_context>
chip_gen: v6e
topology: v6e:2x2x1
jax: 0.10.0
libtpu: 0.0.40
codegen_flags: <defaults>
</compile_context>

<pallas_src>
import functools

import jax
import jax.numpy as jnp
from jax.experimental import pallas as pl
from jax.experimental.pallas import tpu as pltpu


def _round_up(x, m):
    return ((x + m - 1) // m) * m


def _tpu_generation():
    """Best-effort TPU generation detection; 0 -> unknown (conservative)."""
    try:
        kind = jax.devices()[0].device_kind.lower()
    except Exception:
        return 0
    for g in (7, 6, 5, 4):
        if (f"v{g}" in kind) or (f"tpu{g}" in kind) or (f"tpu {g}" in kind):
            return g
    return 0


_TPU_GEN = _tpu_generation()
_HAS_BF16_VPU = _TPU_GEN >= 6          # bf16 VALU on v6e / v7x
_NUM_TENSORCORES = 2 if _TPU_GEN >= 7  else 1   # v7x: 2 TCs per chip


def _make_ncf_kernel(num_layers, ew_dtype):
    """Fused NCF kernel for one (B_BLK, ...) batch block.

    ew_dtype: dtype of the elementwise (bias-add / ReLU) chain.
    """

    def kernel(*refs):
        it = iter(refs)
        ug = next(it)[...]          # (B, F)      f32
        ig = next(it)[...]          # (B, F)      f32
        inter = next(it)[...]       # (B, 2*H0)   bf16 (pre-concatenated)
        w0 = next(it)[...]          # (2*H0, H0)  bf16
        b0 = next(it)[...]          # (1, H0)     ew_dtype
        hidden = [next(it) for _ in range(2 * (num_layers - 1))]
        wg = next(it)[...]          # (1, F)      f32
        wh = next(it)[...]          # (1, F)      f32
        bp = next(it)[...]          # (1, 1)      f32
        out_ref = next(it)          # (B, 1)      f32

        # ---- GMF branch: elementwise product (VPU, f32) ----
        gmf = ug * ig

        # ---- MLP layer 0: one K = 2*H0 matmul on the interaction stream
        #      (Dropout is an eval-mode identity) ----
        h = jnp.dot(inter, w0, preferred_element_type=ew_dtype) + b0
        h = jnp.maximum(h, 0.0)

        # ---- remaining [Dropout(id) -> Linear -> ReLU] layers ----
        for l in range(num_layers - 1):
            w = hidden[2 * l][...]           # bf16
            b = hidden[2 * l + 1][...]       # ew_dtype
            h = jnp.dot(h.astype(jnp.bfloat16), w,
                        preferred_element_type=ew_dtype) + b
            h = jnp.maximum(h, 0.0)

        # ---- prediction: cat(gmf, h) @ Wp + bp done as a VPU multiply +
        #      lane reduction (no N=1 MXU matmul, no lane concat) ----
        pred = jnp.sum(gmf * wg + h.astype(jnp.float32) * wh,
                       axis=-1, keepdims=True) + bp
        out_ref[...] = pred.astype(out_ref.dtype)

    return kernel


def init_ncf_params(key, user_num, item_num, factor_num, num_layers):
    """Deterministic parameter initialization (shapes match the nn.Module).

    MLP embedding tables are stored in bf16 (they only feed bf16 MXU matmuls),
    which halves their gather bytes; GMF tables stay f32 (VPU path).
    """
    keys = jax.random.split(key, 6 + 2 * num_layers)
    ki = iter(range(len(keys)))

    def nrm(k, shape, scale=0.05):
        return (scale * jax.random.normal(keys[k], shape)).astype(jnp.float32)

    h0 = factor_num * 2 ** (num_layers - 1)
    params = {
        "embed_user_GMF": nrm(next(ki), (user_num, factor_num)),
        "embed_item_GMF": nrm(next(ki), (item_num, factor_num)),
        "embed_user_MLP": nrm(next(ki), (user_num, h0)).astype(jnp.bfloat16),
        "embed_item_MLP": nrm(next(ki), (item_num, h0)).astype(jnp.bfloat16),
        "mlp": [],
    }
    for i in range(num_layers):
        in_sz = factor_num * 2 ** (num_layers - i)
        out_sz = in_sz // 2
        # Stored as [in, out] (transposed relative to torch.nn.Linear.weight).
        w = nrm(next(ki), (in_sz, out_sz))
        b = nrm(next(ki), (1, out_sz))
        params["mlp"].append((w, b))
    predict_size = factor_num * 2
    params["predict_w"] = nrm(next(ki), (predict_size, 1))
    params["predict_b"] = nrm(next(ki), (1, 1))
    return params


@functools.partial(jax.jit, static_argnames=("num_layers", "block_rows"))
def ncf_forward(user, item, params, num_layers, block_rows=8192):
    batch = user.shape[0]
    f = params["embed_user_GMF"].shape[1]          # factor_num
    h0 = params["embed_user_MLP"].shape[1]         # factor_num * 2^(L-1)

    ew_dtype = jnp.bfloat16 if _HAS_BF16_VPU else jnp.float32

    # ---- batch tiling ----------------------------------------------------
    # Block rows: multiple of 16 (bf16 sublane pack), capped by (a) the batch,
    # (b) a ~40 MiB VMEM buffer budget (streams are lane-padded to 128), and
    # (c) on 2-TC chips, half the batch so the grid has >= 2 parallel steps.
    lane = 128
    bytes_per_row = 3 * lane * 4 + max(2 * h0, lane) * 2   # ug + ig + out + inter
    vmem_budget = 40 << 20
    max_blk = max(16, ((vmem_budget // (2 * bytes_per_row)) // 16) * 16)

    blk = min(block_rows, max(batch, 1))
    if _NUM_TENSORCORES >= 2 and batch > 16:
        blk = min(blk, -(-batch // 2))          # >= 2 grid steps on v7x
    blk = min(blk, max_blk)
    blk = _round_up(blk, 16)
    padded = _round_up(batch, blk)

    pad = padded - batch
    if pad:
        user = jnp.concatenate([user, jnp.zeros((pad,), user.dtype)])
        item = jnp.concatenate([item, jnp.zeros((pad,), item.dtype)])
    # NOTE: padded tail rows gather embedding row 0, are computed, and are
    # discarded by the final slice -- harmless; do not remove the slice.

    # ---- embedding gathers (indexing glue, stays in XLA) ------------------
    ug = params["embed_user_GMF"][user]                          # (P, F)    f32
    ig = params["embed_item_GMF"][item]                          # (P, F)    f32
    # interaction = torch.cat((embed_user_MLP, embed_item_MLP), -1), bf16.
    inter = jnp.concatenate(
        [params["embed_user_MLP"][user], params["embed_item_MLP"][item]],
        axis=-1).astype(jnp.bfloat16)                            # (P, 2*H0) bf16

    # ---- weights (VMEM-resident across grid steps) -------------------------
    w0, b0 = params["mlp"][0]
    w0 = w0.astype(jnp.bfloat16)                  # (2*H0, H0)
    b0 = b0.astype(ew_dtype)

    hidden = []
    for w, b in params["mlp"][1:]:
        hidden.extend([w.astype(jnp.bfloat16), b.astype(ew_dtype)])

    # Predict weight split into two lane row-vectors (GMF half / MLP half).
    pw = params["predict_w"]                                     # (2F, 1)
    wg = pw[:f, 0].reshape(1, f).astype(jnp.float32)
    wh = pw[f:, 0].reshape(1, f).astype(jnp.float32)
    bp = params["predict_b"].astype(jnp.float32)                 # (1, 1)

    def row_spec(feat):
        return pl.BlockSpec((blk, feat), lambda i: (i, 0))

    def resident_spec(arr):
        return pl.BlockSpec(arr.shape, lambda i, _nd=arr.ndim: (0,) * _nd)

    weights = [w0, b0] + hidden + [wg, wh, bp]
    inputs = [ug, ig, inter] + weights
    in_specs = [row_spec(f), row_spec(f), row_spec(2 * h0)]
    in_specs += [resident_spec(a) for a in weights]

    # VMEM limit computed from the actual footprint (double-buffered streams
    # + resident weights + margin), clamped so it stays well under v7x's
    # 64 MiB physical VMEM.
    weight_bytes = sum(int(a.size) * a.dtype.itemsize for a in weights)
    vmem_limit = 2 * blk * bytes_per_row + weight_bytes + (4 << 20)
    vmem_limit = int(min(max(vmem_limit, 16 << 20), 48 << 20))

    kernel = _make_ncf_kernel(num_layers, ew_dtype)
    out = pl.pallas_call(
        kernel,
        out_shape=jax.ShapeDtypeStruct((padded, 1), jnp.float32),
        grid=(padded // blk,),
        in_specs=in_specs,
        out_specs=pl.BlockSpec((blk, 1), lambda i: (i, 0)),
        compiler_params=pltpu.CompilerParams(
            dimension_semantics=("parallel",),
            vmem_limit_bytes=vmem_limit,
        ),
    )(*inputs)
    return out[:batch, 0]   # == prediction.view(-1)


def ncf_reference(user, item, params, num_layers):
    """Pure-JAX f32 reference for correctness checking."""
    ug = params["embed_user_GMF"][user]
    ig = params["embed_item_GMF"][item]
    gmf = ug * ig
    um = params["embed_user_MLP"][user].astype(jnp.float32)
    im = params["embed_item_MLP"][item].astype(jnp.float32)
    h = jnp.concatenate([um, im], axis=-1)
    for w, b in params["mlp"]:
        h = jnp.maximum(h @ w + b, 0.0)
    concat = jnp.concatenate([gmf, h], axis=-1)
    return (concat @ params["predict_w"] + params["predict_b"]).reshape(-1)


if __name__ == "__main__":
    user_num, item_num = 32, 48
    factor_num, num_layers = 16, 3

    key = jax.random.PRNGKey(0)
    pkey, ukey, ikey = jax.random.split(key, 3)
    params = init_ncf_params(pkey, user_num, item_num, factor_num, num_layers)

    # Case 1: tiny batch, single grid step.
    batch = 8
    user = jax.random.randint(ukey, (batch,), 0, user_num, dtype=jnp.int32)
    item = jax.random.randint(ikey, (batch,), 0, item_num, dtype=jnp.int32)
    out = jax.block_until_ready(ncf_forward(user, item, params, num_layers=num_layers))
    ref = ncf_reference(user, item, params, num_layers)
    assert out.shape == (batch,)
    # bf16 matmul operands / bf16 embeddings (f32 accumulation) vs f32 reference.
    assert jnp.allclose(out, ref, rtol=3e-2, atol=3e-3), (out, ref)

    # Case 2: multi-block grid with a ragged (padded) tail.
    batch2 = 20
    u2key, i2key = jax.random.split(jax.random.PRNGKey(1))
    user2 = jax.random.randint(u2key, (batch2,), 0, user_num, dtype=jnp.int32)
    item2 = jax.random.randint(i2key, (batch2,), 0, item_num, dtype=jnp.int32)
    out2 = jax.block_until_ready(
        ncf_forward(user2, item2, params, num_layers=num_layers, block_rows=8))
    ref2 = ncf_reference(user2, item2, params, num_layers)
    assert out2.shape == (batch2,)
    assert jnp.allclose(out2, ref2, rtol=3e-2, atol=3e-3), (out2, ref2)

    print("KERNEL_OK")
</pallas_src>

<mosaic_0001>
module attributes {stable_mosaic.version = 11 : i64} {
  func.func @kernel(%arg0: i32, %arg1: memref<16x16xf32, #tpu.memory_space<vmem>>, %arg2: memref<16x16xf32, #tpu.memory_space<vmem>>, %arg3: memref<16x128xbf16, #tpu.memory_space<vmem>>, %arg4: memref<128x64xbf16, #tpu.memory_space<vmem>>, %arg5: memref<1x64xf32, #tpu.memory_space<vmem>>, %arg6: memref<64x32xbf16, #tpu.memory_space<vmem>>, %arg7: memref<1x32xf32, #tpu.memory_space<vmem>>, %arg8: memref<32x16xbf16, #tpu.memory_space<vmem>>, %arg9: memref<1x16xf32, #tpu.memory_space<vmem>>, %arg10: memref<1x16xf32, #tpu.memory_space<vmem>>, %arg11: memref<1x16xf32, #tpu.memory_space<vmem>>, %arg12: memref<1x1xf32, #tpu.memory_space<vmem>>, %arg13: memref<16x1xf32, #tpu.memory_space<vmem>>) attributes {dimension_semantics = [#tpu.dimension_semantics<parallel>], iteration_bounds = array<i64: 1>, scalar_prefetch = 0 : i64, scratch_operands = 0 : i64, tpu.core_type = #tpu.core_type<tc>, window_params = [{transform_indices = @transform_0, window_bounds = array<i64: 16, 16>}, {transform_indices = @transform_1, window_bounds = array<i64: 16, 16>}, {transform_indices = @transform_2, window_bounds = array<i64: 16, 128>}, {pipeline_mode = #tpu.pipeline_mode<synchronous>, transform_indices = @transform_3, window_bounds = array<i64: 128, 64>}, {pipeline_mode = #tpu.pipeline_mode<synchronous>, transform_indices = @transform_4, window_bounds = array<i64: 1, 64>}, {pipeline_mode = #tpu.pipeline_mode<synchronous>, transform_indices = @transform_5, window_bounds = array<i64: 64, 32>}, {pipeline_mode = #tpu.pipeline_mode<synchronous>, transform_indices = @transform_6, window_bounds = array<i64: 1, 32>}, {pipeline_mode = #tpu.pipeline_mode<synchronous>, transform_indices = @transform_7, window_bounds = array<i64: 32, 16>}, {pipeline_mode = #tpu.pipeline_mode<synchronous>, transform_indices = @transform_8, window_bounds = array<i64: 1, 16>}, {pipeline_mode = #tpu.pipeline_mode<synchronous>, transform_indices = @transform_9, window_bounds = array<i64: 1, 16>}, {pipeline_mode = #tpu.pipeline_mode<synchronous>, transform_indices = @transform_10, window_bounds = array<i64: 1, 16>}, {pipeline_mode = #tpu.pipeline_mode<synchronous>, transform_indices = @transform_11, window_bounds = array<i64: 1, 1>}, {transform_indices = @transform_12, window_bounds = array<i64: 16, 1>}]} {
    %c0 = arith.constant 0 : index
    %c0_0 = arith.constant 0 : index
    %0 = vector.load %arg1[%c0, %c0_0] : memref<16x16xf32, #tpu.memory_space<vmem>>, vector<16x16xf32>
    %c0_1 = arith.constant 0 : index
    %c0_2 = arith.constant 0 : index
    %1 = vector.load %arg2[%c0_1, %c0_2] : memref<16x16xf32, #tpu.memory_space<vmem>>, vector<16x16xf32>
    %c0_3 = arith.constant 0 : index
    %c0_4 = arith.constant 0 : index
    %2 = vector.load %arg3[%c0_3, %c0_4] : memref<16x128xbf16, #tpu.memory_space<vmem>>, vector<16x128xbf16>
    %c0_5 = arith.constant 0 : index
    %c0_6 = arith.constant 0 : index
    %3 = vector.load %arg4[%c0_5, %c0_6] : memref<128x64xbf16, #tpu.memory_space<vmem>>, vector<128x64xbf16>
    %c0_7 = arith.constant 0 : index
    %c0_8 = arith.constant 0 : index
    %4 = vector.load %arg5[%c0_7, %c0_8] : memref<1x64xf32, #tpu.memory_space<vmem>>, vector<1x64xf32>
    %c0_9 = arith.constant 0 : index
    %c0_10 = arith.constant 0 : index
    %5 = vector.load %arg10[%c0_9, %c0_10] : memref<1x16xf32, #tpu.memory_space<vmem>>, vector<1x16xf32>
    %c0_11 = arith.constant 0 : index
    %c0_12 = arith.constant 0 : index
    %6 = vector.load %arg11[%c0_11, %c0_12] : memref<1x16xf32, #tpu.memory_space<vmem>>, vector<1x16xf32>
    %c0_13 = arith.constant 0 : index
    %c0_14 = arith.constant 0 : index
    %7 = vector.load %arg12[%c0_13, %c0_14] : memref<1x1xf32, #tpu.memory_space<vmem>>, vector<1x1xf32>
    %8 = arith.mulf %0, %1 : vector<16x16xf32>
    %cst = arith.constant dense<0.000000e+00> : vector<16x64xf32>
    %9 = tpu.matmul %2, %3, %cst {dimension_numbers = #tpu.dot_dimension_numbers<[1], [0], [0], [1], [0, 0, 1, 1], [], []>} : vector<16x128xbf16>, vector<128x64xbf16>, vector<16x64xf32> -> vector<16x64xf32>
    %10 = vector.broadcast %4 : vector<1x64xf32> to vector<16x64xf32>
    %11 = arith.addf %9, %10 : vector<16x64xf32>
    %cst_15 = arith.constant 0.000000e+00 : f32
    %12 = vector.broadcast %cst_15 : f32 to vector<16x64xf32>
    %13 = arith.maximumf %11, %12 : vector<16x64xf32>
    %c0_16 = arith.constant 0 : index
    %c0_17 = arith.constant 0 : index
    %14 = vector.load %arg6[%c0_16, %c0_17] : memref<64x32xbf16, #tpu.memory_space<vmem>>, vector<64x32xbf16>
    %c0_18 = arith.constant 0 : index
    %c0_19 = arith.constant 0 : index
    %15 = vector.load %arg7[%c0_18, %c0_19] : memref<1x32xf32, #tpu.memory_space<vmem>>, vector<1x32xf32>
    %16 = arith.truncf %13 : vector<16x64xf32> to vector<16x64xbf16>
    %cst_20 = arith.constant dense<0.000000e+00> : vector<16x32xf32>
    %17 = tpu.matmul %16, %14, %cst_20 {dimension_numbers = #tpu.dot_dimension_numbers<[1], [0], [0], [1], [0, 0, 1, 1], [], []>} : vector<16x64xbf16>, vector<64x32xbf16>, vector<16x32xf32> -> vector<16x32xf32>
    %18 = vector.broadcast %15 : vector<1x32xf32> to vector<16x32xf32>
    %19 = arith.addf %17, %18 : vector<16x32xf32>
    %cst_21 = arith.constant 0.000000e+00 : f32
    %20 = vector.broadcast %cst_21 : f32 to vector<16x32xf32>
    %21 = arith.maximumf %19, %20 : vector<16x32xf32>
    %c0_22 = arith.constant 0 : index
    %c0_23 = arith.constant 0 : index
    %22 = vector.load %arg8[%c0_22, %c0_23] : memref<32x16xbf16, #tpu.memory_space<vmem>>, vector<32x16xbf16>
    %c0_24 = arith.constant 0 : index
    %c0_25 = arith.constant 0 : index
    %23 = vector.load %arg9[%c0_24, %c0_25] : memref<1x16xf32, #tpu.memory_space<vmem>>, vector<1x16xf32>
    %24 = arith.truncf %21 : vector<16x32xf32> to vector<16x32xbf16>
    %cst_26 = arith.constant dense<0.000000e+00> : vector<16x16xf32>
    %25 = tpu.matmul %24, %22, %cst_26 {dimension_numbers = #tpu.dot_dimension_numbers<[1], [0], [0], [1], [0, 0, 1, 1], [], []>} : vector<16x32xbf16>, vector<32x16xbf16>, vector<16x16xf32> -> vector<16x16xf32>
    %26 = vector.broadcast %23 : vector<1x16xf32> to vector<16x16xf32>
    %27 = arith.addf %25, %26 : vector<16x16xf32>
    %cst_27 = arith.constant 0.000000e+00 : f32
    %28 = vector.broadcast %cst_27 : f32 to vector<16x16xf32>
    %29 = arith.maximumf %27, %28 : vector<16x16xf32>
    %30 = vector.broadcast %5 : vector<1x16xf32> to vector<16x16xf32>
    %31 = arith.mulf %8, %30 : vector<16x16xf32>
    %32 = vector.broadcast %6 : vector<1x16xf32> to vector<16x16xf32>
    %33 = arith.mulf %29, %32 : vector<16x16xf32>
    %34 = arith.addf %31, %33 : vector<16x16xf32>
    %cst_28 = arith.constant dense<0.000000e+00> : vector<16xf32>
    %35 = vector.multi_reduction <add>, %34, %cst_28 [1] : vector<16x16xf32> to vector<16xf32>
    %36 = vector.shape_cast %35 : vector<16xf32> to vector<16x1xf32>
    %37 = vector.broadcast %7 : vector<1x1xf32> to vector<16x1xf32>
    %38 = arith.addf %36, %37 : vector<16x1xf32>
    %c0_29 = arith.constant 0 : index
    %c0_30 = arith.constant 0 : index
    %39 = vector.load %arg13[%c0_29, %c0_30] : memref<16x1xf32, #tpu.memory_space<vmem>>, vector<16x1xf32>
    tpu.vector_store %arg13[%c0_29, %c0_30], %38 {strides = array<i32>} : memref<16x1xf32, #tpu.memory_space<vmem>>, vector<16x1xf32>,
    return
  }
  func.func @transform_0(%arg0: i32) -> (i32, i32) {
    %c0_i32 = arith.constant 0 : i32
    %c0_i32_0 = arith.constant 0 : i32
    return %arg0, %c0_i32 : i32, i32
  }
  func.func @transform_1(%arg0: i32) -> (i32, i32) {
    %c0_i32 = arith.constant 0 : i32
    %c0_i32_0 = arith.constant 0 : i32
    return %arg0, %c0_i32 : i32, i32
  }
  func.func @transform_2(%arg0: i32) -> (i32, i32) {
    %c0_i32 = arith.constant 0 : i32
    %c0_i32_0 = arith.constant 0 : i32
    return %arg0, %c0_i32 : i32, i32
  }
  func.func @transform_3(%arg0: i32) -> (i32, i32) {
    %c0_i32 = arith.constant 0 : i32
    %c0_i32_0 = arith.constant 0 : i32
    %c0_i32_1 = arith.constant 0 : i32
    return %c0_i32, %c0_i32_0 : i32, i32
  }
  func.func @transform_4(%arg0: i32) -> (i32, i32) {
    %c0_i32 = arith.constant 0 : i32
    %c0_i32_0 = arith.constant 0 : i32
    %c0_i32_1 = arith.constant 0 : i32
    return %c0_i32, %c0_i32_0 : i32, i32
  }
  func.func @transform_5(%arg0: i32) -> (i32, i32) {
    %c0_i32 = arith.constant 0 : i32
    %c0_i32_0 = arith.constant 0 : i32
    %c0_i32_1 = arith.constant 0 : i32
    return %c0_i32, %c0_i32_0 : i32, i32
  }
  func.func @transform_6(%arg0: i32) -> (i32, i32) {
    %c0_i32 = arith.constant 0 : i32
    %c0_i32_0 = arith.constant 0 : i32
    %c0_i32_1 = arith.constant 0 : i32
    return %c0_i32, %c0_i32_0 : i32, i32
  }
  func.func @transform_7(%arg0: i32) -> (i32, i32) {
    %c0_i32 = arith.constant 0 : i32
    %c0_i32_0 = arith.constant 0 : i32
    %c0_i32_1 = arith.constant 0 : i32
    return %c0_i32, %c0_i32_0 : i32, i32
  }
  func.func @transform_8(%arg0: i32) -> (i32, i32) {
    %c0_i32 = arith.constant 0 : i32
    %c0_i32_0 = arith.constant 0 : i32
    %c0_i32_1 = arith.constant 0 : i32
    return %c0_i32, %c0_i32_0 : i32, i32
  }
  func.func @transform_9(%arg0: i32) -> (i32, i32) {
    %c0_i32 = arith.constant 0 : i32
    %c0_i32_0 = arith.constant 0 : i32
    %c0_i32_1 = arith.constant 0 : i32
    return %c0_i32, %c0_i32_0 : i32, i32
  }
  func.func @transform_10(%arg0: i32) -> (i32, i32) {
    %c0_i32 = arith.constant 0 : i32
    %c0_i32_0 = arith.constant 0 : i32
    %c0_i32_1 = arith.constant 0 : i32
    return %c0_i32, %c0_i32_0 : i32, i32
  }
  func.func @transform_11(%arg0: i32) -> (i32, i32) {
    %c0_i32 = arith.constant 0 : i32
    %c0_i32_0 = arith.constant 0 : i32
    %c0_i32_1 = arith.constant 0 : i32
    return %c0_i32, %c0_i32_0 : i32, i32
  }
  func.func @transform_12(%arg0: i32) -> (i32, i32) {
    %c0_i32 = arith.constant 0 : i32
    %c0_i32_0 = arith.constant 0 : i32
    return %arg0, %c0_i32 : i32, i32
  }
}

</mosaic_0001>

<bundles_post_ra>
// kernel: ncf_forward.1
= control target key start
LH: loop header
LB: loop body
LE: loop exit
PB: predicated region body
PF: predicated region fallthrough
CT: control target
= control target key end

     0   :  { %v470_v0 = vmov 0.0   ;;  %vm471_vm0 = vmmov 0   ;;  %vm215_vm1 = vcmask 523264   ;;  %vm286_vm2 = vcmask 261120   ;;  %s621_s3 = inlined_call_operand.vmem [shape: bf16[128,64], index: 3, kind: input, shape index: {}]   ;;  %s622_s5 = inlined_call_operand.vmem [shape: bf16[64,32], index: 5, kind: input, shape index: {}]   ;;  %s623_s2 = inlined_call_operand.vmem [shape: bf16[16,128], index: 2, kind: input, shape index: {}]   ;;  %s624_s4 = inlined_call_operand.vmem [shape: f32[1,64], index: 4, kind: input, shape index: {}]   ;;  %s625_s7 = inlined_call_operand.vmem [shape: bf16[32,16], index: 7, kind: input, shape index: {}]   ;;  %s626_s6 = inlined_call_operand.vmem [shape: f32[1,32], index: 6, kind: input, shape index: {}]   ;;  %s627_s11 = inlined_call_operand.<no memory space> [shape: f32[1,1], index: 11, kind: input, shape index: {}]   ;;  %s628_s0 = inlined_call_operand.vmem [shape: f32[16,16], index: 0, kind: input, shape index: {}]   ;;  %s629_s1 = inlined_call_operand.vmem [shape: f32[16,16], index: 1, kind: input, shape index: {}]   ;;  %s630_s8 = inlined_call_operand.vmem [shape: f32[1,16], index: 8, kind: input, shape index: {}]   ;;  %s631_s9 = inlined_call_operand.vmem [shape: f32[1,16], index: 9, kind: input, shape index: {}]   ;;  %s632_s10 = inlined_call_operand.vmem [shape: f32[1,16], index: 10, kind: input, shape index: {}]   ;;  %s633_s12 = inlined_call_operand.vmem [shape: f32[16,1], index: 12, kind: output, shape index: {}]  }
   0x1   :  { %413 = vmatprep.subr.bf16.mxu0 %v470_v0  ;;  %v455_v1 = vld [vmem:[%s621_s3 + $0x38] sm:$0xff]   ;;  %429 = vmatprep.mubr.msk.bf16.mxu0 %vm471_vm0, %v470_v0  ;;  %v456_v2 = vld [vmem:[%s621_s3 + $0x30] sm:$0xff]   ;;  %v457_v3 = vld [vmem:[%s621_s3 + $0x28] sm:$0xff]   ;;  %v17_v36 = vstv %s627_s11  ;;  %vm351_vm3 = vcmask 130048   ;;  %vm366_vm4 = vcmask 7168  }
   0x2   :  { %433 = vmatprep.subr.bf16.mxu1 %v470_v0  ;;  %441 = vmatprep.mubr.msk.bf16.mxu1 %vm471_vm0, %v470_v0  ;;  %v464_v4 = vld [vmem:[%s622_s5 + $0x18] sm:$0xff]   ;;  %v458_v5 = vld [vmem:[%s621_s3 + $0x20] sm:$0xff]   ;;  %v460_v7 = vld [vmem:[%s621_s3 + $0x10] sm:$0xff]   ;;  %18 = vst [vmem:[#allocation2] sm:$0x1] %v17_v36 }
   0x3   :  { %414 = vmatpush3.bf16.msra.mxu0 %v455_v1  ;;  %434 = vmatpush3.bf16.msra.mxu1 %v464_v4  ;;  %v459_v6 = vld [vmem:[%s621_s3 + $0x18] sm:$0xff]   ;;  %v461_v8 = vld [vmem:[%s621_s3 + $0x8] sm:$0xff]   ;;  %v462_v9 = vld [vmem:[%s621_s3] sm:$0xff]  }
   0x4   :  { %415 = vmatprep.subr.bf16.mxu0 %v470_v0  ;;  %435 = vmatprep.subr.bf16.mxu1 %v470_v0  ;;  %v463_v10 = vld [vmem:[%s623_s2] sm:$0xff]   ;;  %v465_v11 = vld [vmem:[%s622_s5 + $0x10] sm:$0xff]   ;;  %v466_v12 = vld [vmem:[%s622_s5 + $0x8] sm:$0xff]  }
   0x5   :  { %v467_v13 = vld [vmem:[%s622_s5] sm:$0xff]   ;;  %v468_v24 = vld [vmem:[%s625_s7 + $0x8] sm:$0xff]  }
   0x6   :  { %v373_v14 = vld [vmem:[%s624_s4] ss:$0 sm:$0xff]  ;;  %v45_v43 = vld [vmem:[%s628_s0 + $0x8] sm:$0xff] }
   0x7   :  { %416 = vmatpush3.bf16.msra.mxu0 %v456_v2  ;;  %436 = vmatpush3.bf16.msra.mxu1 %v465_v11  ;;  %v469_v25 = vld [vmem:[%s625_s7] sm:$0xff]   ;;  %v47_v44 = vld [vmem:[%s629_s1 + $0x8] sm:$0xff] }
   0x8   :  { %417 = vmatprep.subr.bf16.mxu0 %v470_v0  ;;  %437 = vmatprep.subr.bf16.mxu1 %v470_v0  ;;  %v383_v26 = vld [vmem:[%s626_s6] ss:$0 sm:$0xff]  ;;  %v71_v50 = vmul.f32 %v47_v44, %v45_v43 }
   0x9   :  { %v44_v37 = vld [vmem:[%s628_s0] sm:$0xff] }
   0xa   :  { %v46_v38 = vld [vmem:[%s629_s1] sm:$0xff] }
   0xb   :  { %418 = vmatpush3.bf16.msra.mxu0 %v457_v3  ;;  %438 = vmatpush3.bf16.msra.mxu1 %v466_v12  ;;  %v389_v39 = vld [vmem:[%s630_s8] ss:$0 sm:$0xff]  ;;  %v70_v40 = vmul.f32 %v46_v38, %v44_v37 }
   0xc   :  { %419 = vmatprep.subr.bf16.mxu0 %v470_v0  ;;  %439 = vmatprep.subr.bf16.mxu1 %v470_v0  ;;  %v393_v42 = vld [vmem:[%s631_s9] ss:$0 sm:$0xff] }
   0xd   :  { %v394_v46 = vld [vmem:[%s632_s10] ss:$0 sm:$0xff]  ;;  %v339_v49 = vmul.f32 %v393_v42, %v70_v40  ;;  %v340_v57 = vmul.f32 %v393_v42, %v71_v50 }
   0xe   :  { %v395_v62 = vld [vmem:[#allocation2] ss:$0 sm:$0xff] }
   0xf   :  { %420 = vmatpush3.bf16.msra.mxu0 %v458_v5  ;;  %440 = vmatpush3.bf16.msra.mxu1 %v467_v13 }
  0x10   :  { %421 = vmatprep.subr.bf16.mxu0 %v470_v0  ;;  %445 = vmatprep.subr.bf16.mxu1 %v470_v0 }
  0x13   :  { %422 = vmatpush3.bf16.msra.mxu0 %v459_v6 }
  0x14   :  { %423 = vmatprep.subr.bf16.mxu0 %v470_v0 }
  0x17   :  { %424 = vmatpush3.bf16.msra.mxu0 %v460_v7 }
  0x18   :  { %425 = vmatprep.subr.bf16.mxu0 %v470_v0 }
  0x1b   :  { %426 = vmatpush3.bf16.msra.mxu0 %v461_v8 }
  0x1c   :  { %427 = vmatprep.subr.bf16.mxu0 %v470_v0 }
  0x1f   :  { %428 = vmatpush3.bf16.msra.mxu0 %v462_v9 }
  0x22   :  { %430 = vmatmul.mubr.bf16.vlgmr.msra.gmra.mxu0 %v463_v10 }
  0xe2   :  { %v166_v15 = vpop.f32.mrf.mxu0 }
  0xe3   :  { %v167_v17 = vadd.f32 %v373_v14, %v166_v15 }
  0xe4   :  { %v431_v16 = vpop.f32.mrf.mxu0 }
  0xe5   :  { %v173_v21 = vmax.f32 %v167_v17, 0.0 }
  0xe6   :  { %v169_v18 = vpop.f32.mrf.mxu0 }
  0xe7   :  { %v170_v19 = vadd.f32 %v373_v14, %v169_v18 }
  0xe8   :  { %v432_v20 = vpop.f32.mrf.mxu0 }
  0xe9   :  { %v174_v22 = vmax.f32 %v170_v19, 0.0 }
  0xeb   :  { %v184_v23 = vpack.c.bf16 %v174_v22, %v173_v21 }
  0xed   :  { %442 = vmatmul.mubr.msk.bf16.vlgmr.msra.gmra.mxu1 %vm215_vm1, %v184_v23 }
  0xee   :  { %449 = vmatprep.mubr.msk.bf16.mxu1 %vm471_vm0, %v470_v0  ;;  %446 = vmatpush3.bf16.msra.mxu1 %v468_v24 }
  0xef   :  { %447 = vmatprep.subr.bf16.mxu1 %v470_v0 }
  0xf2   :  { %448 = vmatpush3.bf16.msra.mxu1 %v469_v25 }
 0x1ad   :  { %v253_v27 = vpop.f32.mrf.mxu1 }
 0x1ae   :  { %v254_v29 = vadd.f32 %v383_v26, %v253_v27 }
 0x1af   :  { %v443_v28 = vpop.f32.mrf.mxu1 }
 0x1b0   :  { %v260_v33 = vmax.f32 %v254_v29, 0.0 }
 0x1b1   :  { %v256_v30 = vpop.f32.mrf.mxu1 }
 0x1b2   :  { %v257_v31 = vadd.f32 %v383_v26, %v256_v30 }
 0x1b3   :  { %v444_v32 = vpop.f32.mrf.mxu1 }
 0x1b4   :  { %v261_v34 = vmax.f32 %v257_v31, 0.0 }
 0x1b6   :  { %v267_v35 = vpack.c.bf16 %v261_v34, %v260_v33 }
 0x1b8   :  { %450 = vmatmul.mubr.msk.bf16.vlgmr.msra.gmra.mxu1 %vm286_vm2, %v267_v35 }
 0x278   :  { %v324_v41 = vpop.f32.mrf.mxu1 }
 0x279   :  { %v325_v45 = vadd.f32 %v389_v39, %v324_v41 }
 0x27a   :  { %v451_v47 = vpop.f32.mrf.mxu1 }
 0x27b   :  { %v331_v48 = vmax.f32 %v325_v45, 0.0 }
 0x27c   :  { %v327_v51 = vpop.f32.mrf.mxu1 }
 0x27d   :  { %v347_v52 = vmul.f32 %v394_v46, %v331_v48  ;;  %v328_v53 = vadd.f32 %v389_v39, %v327_v51 }
 0x27e   :  { %v452_v54 = vpop.f32.mrf.mxu1 }
 0x27f   :  { %v332_v55 = vmax.f32 %v328_v53, 0.0  ;;  %v349_v56 = vadd.f32 %v347_v52, %v339_v49 }
 0x281   :  { %v348_v58 = vmul.f32 %v394_v46, %v332_v55  ;;  %v352_v59 = vsel %vm351_vm3, %v349_v56, 0.0 }
 0x282   :  { %353 = vadd.xlane.f32.xlu0 %v352_v59 }
 0x283   :  { %v350_v60 = vadd.f32 %v348_v58, %v340_v57 }
 0x285   :  { %v355_v61 = vsel %vm351_vm3, %v350_v60, 0.0 }
 0x286   :  { %356 = vadd.xlane.f32.xlu0 %v355_v61 }
 0x30b   :  { %v354_v63 = vpop.xlane.xlu0 %353 }
 0x30c   :  { %v364_v0 = vadd.f32 %v395_v62, %v354_v63 }
 0x30e   :  { %367 = vst.msk [vmem:[%s633_s12] sm:$0xff] %vm366_vm4, %v364_v0 }
 0x30f   :  { %v357_v1 = vpop.xlane.xlu0 %356 }
 0x310   :  { %v365_v2 = vadd.f32 %v395_v62, %v357_v1 }
 0x312   :  { %368 = vst.msk [vmem:[%s633_s12 + $0x8] sm:$0xff] %vm366_vm4, %v365_v2 }

</bundles_post_ra>
